<compile_context>
chip_gen: v6e
topology: v6e:2x2x1
jax: 0.10.0
libtpu: 0.0.40
codegen_flags: <defaults>
</compile_context>

<pallas_src>
import jax
import jax.numpy as jnp
import numpy as np
from jax.experimental import pallas as pl
from jax.experimental.pallas import tpu as pltpu

# ---------------- hyper-parameters (deterministic, in-script) ----------------
BATCH = 2
GRID = 16                      # grid_h = grid_w
NUM_BIN = 8
LOSS_WEIGHTS = (0.5, 2.0, 1.5, 0.25)   # H['loss_weights']
W0 = LOSS_WEIGHTS[:2]
W1 = LOSS_WEIGHTS[2:4]
# NLL class weights for the 3-way junction confidence: [1, 1, 0]
EPS = 1e-30


def _loss_kernel(jlogit_ref, jconf_ref, jloc_ref, jres_ref,
                 blogit_ref, bconf_ref, bres_ref, bresvar_ref,
                 out_ref):
    f32 = jnp.float32

    # ---- masks from the junction confidence targets (cast in-kernel) ----
    jc = jconf_ref[...]                                    # (B, HW)
    wmask = (jc < 2).astype(f32)                           # class-2 weight = 0
    mask_junc = (jc == 1).astype(f32)

    # ---- junction confidence: weighted 3-way NLL over log_softmax ----
    jl = jlogit_ref[...]                                   # (B, 3, HW) f32
    l0 = jl[:, 0, :]
    l1 = jl[:, 1, :]
    l2 = jl[:, 2, :]
    m = jnp.maximum(jnp.maximum(l0, l1), l2)
    lse = m + jnp.log(jnp.exp(l0 - m) + jnp.exp(l1 - m) + jnp.exp(l2 - m))
    # jc==2 entries are multiplied by wmask == 0, so the class-2 branch of the
    # target select is irrelevant -> one compare+select instead of two.
    sel = jnp.where(jc == 0, l0, l1)
    jconf_map = wmask * (lse - sel)                        # (B, HW)

    # ---- junction residual: masked MSE over the 2 location channels ----
    diff = jloc_ref[...] - jres_ref[...]                   # (B, 2, HW)
    jres_map = mask_junc[:, None, :] * (diff * diff)

    # ---- bin residual: masked MSE (K=8 -> full sublane occupancy) ----
    mask_bin = bconf_ref[...].astype(f32)                  # (B, K, HW)
    bdiff = bres_ref[...] - bresvar_ref[...]
    bres_map = mask_bin * (bdiff * bdiff)

    # ---- bin confidence: 2-class NLL == BCE-with-logits (softplus form) ----
    bl = blogit_ref[...]                                   # (B, 2, K, HW)
    d = bl[:, 1] - bl[:, 0]                                # (B, K, HW)
    softplus = jnp.maximum(d, 0.0) + jnp.log(1.0 + jnp.exp(-jnp.abs(d)))
    bconf_map = mask_junc[:, None, :] * (softplus - mask_bin * d)

    # ---- fused, fully vectorized reductions + epilogue --------------------
    def rowsum(x):                                         # -> (1, HW) partial
        if x.ndim > 2:
            x = jnp.sum(x, axis=tuple(range(x.ndim - 2)))
        return jnp.sum(x, axis=0, keepdims=True)

    num_junc_row = rowsum(mask_junc)
    # numerators on sublanes 0..3; matching denominators on the same sublanes
    # of a second stack (num_junc appears twice; NUM_BIN is folded in below).
    numer = jnp.concatenate([rowsum(jconf_map), rowsum(jres_map),
                             rowsum(bconf_map), rowsum(bres_map)], axis=0)
    denom = jnp.concatenate([rowsum(wmask), num_junc_row,
                             num_junc_row, rowsum(mask_bin)], axis=0)

    numer_tot = jnp.sum(numer, axis=-1, keepdims=True)     # (4, 1)
    denom_tot = jnp.sum(denom, axis=-1, keepdims=True)     # (4, 1)

    ridx = jax.lax.broadcasted_iota(jnp.int32, (4, 1), 0)
    # fold NUM_BIN into a per-row scale (bin_conf denominator is num_junc * K)
    scale = jnp.where(ridx == 2, 1.0 / NUM_BIN, 1.0).astype(f32)
    # exact vector divide (approx reciprocal would violate rtol=1e-5)
    losses = numer_tot / (denom_tot + EPS) * scale         # (4, 1)
    # rows: [junc_conf, junc_res, bin_conf, bin_res]

    w = jnp.where(ridx == 0, W0[0],
                  jnp.where(ridx == 1, W0[1],
                            jnp.where(ridx == 2, W1[0], W1[1]))).astype(f32)
    total = jnp.sum(losses * w, axis=0, keepdims=True)     # (1, 1)

    # single unmasked lane-dense store of the whole (8, 128) result tile:
    # sublane 0 = total loss, sublanes 1..4 = the four individual losses.
    out_ref[...] = jnp.concatenate(
        [jnp.broadcast_to(total, (1, out_ref.shape[-1])),
         jnp.broadcast_to(losses, (4, out_ref.shape[-1])),
         jnp.zeros((3, out_ref.shape[-1]), f32)], axis=0)


def balance_loss(junction_logits, junction_loc, bin_logits, bin_residual,
                 junc_conf_var, junc_res_var, bin_conf_var, bin_res_var):
    B, _, H, W = junction_logits.shape
    K = bin_logits.shape[2]
    HW = H * W

    # glue: pure reshapes only (no transposes, no data movement); the spatial
    # axis H*W lands on the lane (last) dimension of every input.  Confidence
    # targets keep their upstream dtype; casts happen inside the kernel.
    jlogit = junction_logits.reshape(B, 3, HW)
    jconf = junc_conf_var.reshape(B, HW)
    jloc = junction_loc.reshape(B, 2, HW)
    jres = junc_res_var.reshape(B, 2, HW)
    blogit = bin_logits.reshape(B, 2, K, HW)
    bconf = bin_conf_var.reshape(B, K, HW)
    bres = bin_residual.reshape(B, K, HW)
    bresv = bin_res_var.reshape(B, K, HW)

    n = B * HW
    nk = n * K
    cost = pl.CostEstimate(
        flops=16 * nk + 24 * n,
        transcendentals=2 * nk + 4 * n,
        bytes_accessed=4 * (8 * n + 5 * nk) + 4 * 8 * 128,
    )

    vmem = pl.BlockSpec(memory_space=pltpu.MemorySpace.VMEM)
    out = pl.pallas_call(
        _loss_kernel,
        out_shape=jax.ShapeDtypeStruct((8, 128), jnp.float32),
        in_specs=[vmem] * 8,
        out_specs=vmem,
        cost_estimate=cost,
    )(jlogit, jconf, jloc, jres, blogit, bconf, bres, bresv)
    return out[0, 0], out[1, 0], out[2, 0], out[3, 0], out[4, 0]


def _reference(junction_logits, junction_loc, bin_logits, bin_residual,
               junc_conf_var, junc_res_var, bin_conf_var, bin_res_var):
    """Pure-JAX reference mirroring the PyTorch forward (intended broadcast)."""
    weights = jnp.array([1.0, 1.0, 0.0], jnp.float32)
    mask = (junc_conf_var < 2).astype(jnp.float32)
    select_junc_num = jnp.sum(mask)
    mask_junc = (junc_conf_var == 1).astype(jnp.float32)
    num_junc = jnp.sum(mask_junc)
    mask_bin = bin_conf_var.astype(jnp.float32)
    num_true_bin = jnp.sum(mask_bin)

    logp = jax.nn.log_softmax(junction_logits, axis=1)            # (B,3,H,W)
    oh = jax.nn.one_hot(junc_conf_var, 3, axis=1, dtype=jnp.float32)
    nll = -jnp.sum(oh * logp, axis=1) * weights[junc_conf_var]
    junc_conf_loss = jnp.sum(nll) / (select_junc_num + EPS)

    jres = (junction_loc - junc_res_var) ** 2
    junc_res_loss = jnp.sum(mask_junc[:, None] * jres) / (num_junc + EPS)

    bres = (bin_residual - bin_res_var) ** 2
    bin_res_loss = jnp.sum(bres * mask_bin) / (num_true_bin + EPS)

    blogp = jax.nn.log_softmax(bin_logits, axis=1)                # (B,2,K,H,W)
    boh = jax.nn.one_hot(bin_conf_var, 2, axis=1, dtype=jnp.float32)
    bnll = -jnp.sum(boh * blogp, axis=1)                          # (B,K,H,W)
    bin_conf_loss = jnp.sum(bnll * mask_junc[:, None]) / (num_junc * NUM_BIN + EPS)

    loss = (junc_conf_loss * W0[0] + junc_res_loss * W0[1]
            + bin_conf_loss * W1[0] + bin_res_loss * W1[1])
    return loss, junc_conf_loss, junc_res_loss, bin_conf_loss, bin_res_loss


if __name__ == "__main__":
    key = jax.random.PRNGKey(0)
    ks = jax.random.split(key, 8)
    B, H, W, K = BATCH, GRID, GRID, NUM_BIN

    junction_logits = jax.random.normal(ks[0], (B, 3, H, W), jnp.float32)
    junction_loc = jax.random.normal(ks[1], (B, 2, H, W), jnp.float32)
    bin_logits = jax.random.normal(ks[2], (B, 2, K, H, W), jnp.float32)
    bin_residual = jax.random.normal(ks[3], (B, K, H, W), jnp.float32)
    junc_conf_var = jax.random.randint(ks[4], (B, H, W), 0, 3, jnp.int32)
    junc_res_var = jax.random.normal(ks[5], (B, 2, H, W), jnp.float32)
    bin_conf_var = jax.random.randint(ks[6], (B, K, H, W), 0, 2, jnp.int32)
    bin_res_var = jax.random.normal(ks[7], (B, K, H, W), jnp.float32)

    args = (junction_logits, junction_loc, bin_logits, bin_residual,
            junc_conf_var, junc_res_var, bin_conf_var, bin_res_var)

    out = balance_loss(*args)
    out = jax.block_until_ready(out)
    ref = _reference(*args)
    np.testing.assert_allclose(np.array(out), np.array(ref), rtol=1e-5, atol=1e-5)
    print("KERNEL_OK")
</pallas_src>

<mosaic_0001>
module attributes {stable_mosaic.version = 11 : i64} {
  func.func @_loss_kernel(%arg0: memref<2x3x256xf32, #tpu.memory_space<vmem>>, %arg1: memref<2x256xi32, #tpu.memory_space<vmem>>, %arg2: memref<2x2x256xf32, #tpu.memory_space<vmem>>, %arg3: memref<2x2x256xf32, #tpu.memory_space<vmem>>, %arg4: memref<2x2x8x256xf32, #tpu.memory_space<vmem>>, %arg5: memref<2x8x256xi32, #tpu.memory_space<vmem>>, %arg6: memref<2x8x256xf32, #tpu.memory_space<vmem>>, %arg7: memref<2x8x256xf32, #tpu.memory_space<vmem>>, %arg8: memref<8x128xf32, #tpu.memory_space<vmem>>) attributes {dimension_semantics = [], scalar_prefetch = 0 : i64, scratch_operands = 0 : i64, tpu.core_type = #tpu.core_type<tc>} {
    %c0 = arith.constant 0 : index
    %c0_0 = arith.constant 0 : index
    %0 = vector.load %arg1[%c0, %c0_0] : memref<2x256xi32, #tpu.memory_space<vmem>>, vector<2x256xi32>
    %c2_i32 = arith.constant 2 : i32
    %1 = vector.broadcast %c2_i32 : i32 to vector<2x256xi32>
    %2 = arith.cmpi slt, %0, %1 : vector<2x256xi32>
    %3 = arith.extui %2 : vector<2x256xi1> to vector<2x256xi32>
    %4 = arith.sitofp %3 : vector<2x256xi32> to vector<2x256xf32>
    %c1_i32 = arith.constant 1 : i32
    %5 = vector.broadcast %c1_i32 : i32 to vector<2x256xi32>
    %6 = arith.cmpi eq, %0, %5 : vector<2x256xi32>
    %7 = arith.extui %6 : vector<2x256xi1> to vector<2x256xi32>
    %8 = arith.sitofp %7 : vector<2x256xi32> to vector<2x256xf32>
    %c0_1 = arith.constant 0 : index
    %c0_2 = arith.constant 0 : index
    %c0_3 = arith.constant 0 : index
    %9 = vector.load %arg0[%c0_1, %c0_2, %c0_3] : memref<2x3x256xf32, #tpu.memory_space<vmem>>, vector<2x3x256xf32>
    %10 = vector.extract_strided_slice %9 {offsets = [0, 0, 0], sizes = [2, 1, 256], strides = [1, 1, 1]} : vector<2x3x256xf32> to vector<2x1x256xf32>
    %11 = vector.shape_cast %10 : vector<2x1x256xf32> to vector<2x256xf32>
    %12 = vector.extract_strided_slice %9 {offsets = [0, 1, 0], sizes = [2, 1, 256], strides = [1, 1, 1]} : vector<2x3x256xf32> to vector<2x1x256xf32>
    %13 = vector.shape_cast %12 : vector<2x1x256xf32> to vector<2x256xf32>
    %14 = vector.extract_strided_slice %9 {offsets = [0, 2, 0], sizes = [2, 1, 256], strides = [1, 1, 1]} : vector<2x3x256xf32> to vector<2x1x256xf32>
    %15 = vector.shape_cast %14 : vector<2x1x256xf32> to vector<2x256xf32>
    %16 = arith.maximumf %11, %13 : vector<2x256xf32>
    %17 = arith.maximumf %16, %15 : vector<2x256xf32>
    %18 = arith.subf %11, %17 : vector<2x256xf32>
    %19 = math.exp %18 : vector<2x256xf32>
    %20 = arith.subf %13, %17 : vector<2x256xf32>
    %21 = math.exp %20 : vector<2x256xf32>
    %22 = arith.addf %19, %21 : vector<2x256xf32>
    %23 = arith.subf %15, %17 : vector<2x256xf32>
    %24 = math.exp %23 : vector<2x256xf32>
    %25 = arith.addf %22, %24 : vector<2x256xf32>
    %26 = math.log %25 : vector<2x256xf32>
    %27 = arith.addf %17, %26 : vector<2x256xf32>
    %c0_i32 = arith.constant 0 : i32
    %28 = vector.broadcast %c0_i32 : i32 to vector<2x256xi32>
    %29 = arith.cmpi eq, %0, %28 : vector<2x256xi32>
    %30 = arith.select %29, %11, %13 : vector<2x256xi1>, vector<2x256xf32>
    %31 = arith.subf %27, %30 : vector<2x256xf32>
    %32 = arith.mulf %4, %31 : vector<2x256xf32>
    %c0_4 = arith.constant 0 : index
    %c0_5 = arith.constant 0 : index
    %c0_6 = arith.constant 0 : index
    %33 = vector.load %arg2[%c0_4, %c0_5, %c0_6] : memref<2x2x256xf32, #tpu.memory_space<vmem>>, vector<2x2x256xf32>
    %c0_7 = arith.constant 0 : index
    %c0_8 = arith.constant 0 : index
    %c0_9 = arith.constant 0 : index
    %34 = vector.load %arg3[%c0_7, %c0_8, %c0_9] : memref<2x2x256xf32, #tpu.memory_space<vmem>>, vector<2x2x256xf32>
    %35 = arith.subf %33, %34 : vector<2x2x256xf32>
    %36 = vector.shape_cast %8 : vector<2x256xf32> to vector<2x1x256xf32>
    %37 = arith.mulf %35, %35 : vector<2x2x256xf32>
    %38 = vector.broadcast %36 : vector<2x1x256xf32> to vector<2x2x256xf32>
    %39 = arith.mulf %38, %37 : vector<2x2x256xf32>
    %c0_10 = arith.constant 0 : index
    %c0_11 = arith.constant 0 : index
    %c0_12 = arith.constant 0 : index
    %40 = vector.load %arg5[%c0_10, %c0_11, %c0_12] : memref<2x8x256xi32, #tpu.memory_space<vmem>>, vector<2x8x256xi32>
    %41 = arith.sitofp %40 : vector<2x8x256xi32> to vector<2x8x256xf32>
    %c0_13 = arith.constant 0 : index
    %c0_14 = arith.constant 0 : index
    %c0_15 = arith.constant 0 : index
    %42 = vector.load %arg6[%c0_13, %c0_14, %c0_15] : memref<2x8x256xf32, #tpu.memory_space<vmem>>, vector<2x8x256xf32>
    %c0_16 = arith.constant 0 : index
    %c0_17 = arith.constant 0 : index
    %c0_18 = arith.constant 0 : index
    %43 = vector.load %arg7[%c0_16, %c0_17, %c0_18] : memref<2x8x256xf32, #tpu.memory_space<vmem>>, vector<2x8x256xf32>
    %44 = arith.subf %42, %43 : vector<2x8x256xf32>
    %45 = arith.mulf %44, %44 : vector<2x8x256xf32>
    %46 = arith.mulf %41, %45 : vector<2x8x256xf32>
    %c0_19 = arith.constant 0 : index
    %c0_20 = arith.constant 0 : index
    %c0_21 = arith.constant 0 : index
    %c0_22 = arith.constant 0 : index
    %47 = vector.load %arg4[%c0_19, %c0_20, %c0_21, %c0_22] : memref<2x2x8x256xf32, #tpu.memory_space<vmem>>, vector<2x2x8x256xf32>
    %48 = vector.extract_strided_slice %47 {offsets = [0, 1, 0, 0], sizes = [2, 1, 8, 256], strides = [1, 1, 1, 1]} : vector<2x2x8x256xf32> to vector<2x1x8x256xf32>
    %49 = vector.shape_cast %48 : vector<2x1x8x256xf32> to vector<2x8x256xf32>
    %50 = vector.extract_strided_slice %47 {offsets = [0, 0, 0, 0], sizes = [2, 1, 8, 256], strides = [1, 1, 1, 1]} : vector<2x2x8x256xf32> to vector<2x1x8x256xf32>
    %51 = vector.shape_cast %50 : vector<2x1x8x256xf32> to vector<2x8x256xf32>
    %52 = arith.subf %49, %51 : vector<2x8x256xf32>
    %cst = arith.constant 0.000000e+00 : f32
    %53 = vector.broadcast %cst : f32 to vector<2x8x256xf32>
    %54 = arith.maximumf %52, %53 : vector<2x8x256xf32>
    %55 = math.absf %52 : vector<2x8x256xf32>
    %cst_23 = arith.constant 0.000000e+00 : f32
    %56 = vector.broadcast %cst_23 : f32 to vector<2x8x256xf32>
    %57 = arith.subf %56, %55 : vector<2x8x256xf32>
    %58 = math.exp %57 : vector<2x8x256xf32>
    %cst_24 = arith.constant 1.000000e+00 : f32
    %59 = vector.broadcast %cst_24 : f32 to vector<2x8x256xf32>
    %60 = arith.addf %59, %58 : vector<2x8x256xf32>
    %61 = math.log %60 : vector<2x8x256xf32>
    %62 = arith.addf %54, %61 : vector<2x8x256xf32>
    %63 = vector.shape_cast %8 : vector<2x256xf32> to vector<2x1x256xf32>
    %64 = arith.mulf %41, %52 : vector<2x8x256xf32>
    %65 = arith.subf %62, %64 : vector<2x8x256xf32>
    %66 = vector.broadcast %63 : vector<2x1x256xf32> to vector<2x8x256xf32>
    %67 = arith.mulf %66, %65 : vector<2x8x256xf32>
    %cst_25 = arith.constant dense<0.000000e+00> : vector<256xf32>
    %68 = vector.multi_reduction <add>, %8, %cst_25 [0] : vector<2x256xf32> to vector<256xf32>
    %69 = vector.shape_cast %68 : vector<256xf32> to vector<1x256xf32>
    %cst_26 = arith.constant dense<0.000000e+00> : vector<256xf32>
    %70 = vector.multi_reduction <add>, %32, %cst_26 [0] : vector<2x256xf32> to vector<256xf32>
    %71 = vector.shape_cast %70 : vector<256xf32> to vector<1x256xf32>
    %cst_27 = arith.constant dense<0.000000e+00> : vector<2x256xf32>
    %72 = vector.multi_reduction <add>, %39, %cst_27 [0] : vector<2x2x256xf32> to vector<2x256xf32>
    %cst_28 = arith.constant dense<0.000000e+00> : vector<256xf32>
    %73 = vector.multi_reduction <add>, %72, %cst_28 [0] : vector<2x256xf32> to vector<256xf32>
    %74 = vector.shape_cast %73 : vector<256xf32> to vector<1x256xf32>
    %cst_29 = arith.constant dense<0.000000e+00> : vector<8x256xf32>
    %75 = vector.multi_reduction <add>, %67, %cst_29 [0] : vector<2x8x256xf32> to vector<8x256xf32>
    %cst_30 = arith.constant dense<0.000000e+00> : vector<256xf32>
    %76 = vector.multi_reduction <add>, %75, %cst_30 [0] : vector<8x256xf32> to vector<256xf32>
    %77 = vector.shape_cast %76 : vector<256xf32> to vector<1x256xf32>
    %cst_31 = arith.constant dense<0.000000e+00> : vector<8x256xf32>
    %78 = vector.multi_reduction <add>, %46, %cst_31 [0] : vector<2x8x256xf32> to vector<8x256xf32>
    %cst_32 = arith.constant dense<0.000000e+00> : vector<256xf32>
    %79 = vector.multi_reduction <add>, %78, %cst_32 [0] : vector<8x256xf32> to vector<256xf32>
    %80 = vector.shape_cast %79 : vector<256xf32> to vector<1x256xf32>
    %81 = tpu.concatenate %71, %74, %77, %80 in 0 : vector<1x256xf32>, vector<1x256xf32>, vector<1x256xf32>, vector<1x256xf32> -> vector<4x256xf32>
    %cst_33 = arith.constant dense<0.000000e+00> : vector<256xf32>
    %82 = vector.multi_reduction <add>, %4, %cst_33 [0] : vector<2x256xf32> to vector<256xf32>
    %83 = vector.shape_cast %82 : vector<256xf32> to vector<1x256xf32>
    %cst_34 = arith.constant dense<0.000000e+00> : vector<8x256xf32>
    %84 = vector.multi_reduction <add>, %41, %cst_34 [0] : vector<2x8x256xf32> to vector<8x256xf32>
    %cst_35 = arith.constant dense<0.000000e+00> : vector<256xf32>
    %85 = vector.multi_reduction <add>, %84, %cst_35 [0] : vector<8x256xf32> to vector<256xf32>
    %86 = vector.shape_cast %85 : vector<256xf32> to vector<1x256xf32>
    %87 = tpu.concatenate %83, %69, %69, %86 in 0 : vector<1x256xf32>, vector<1x256xf32>, vector<1x256xf32>, vector<1x256xf32> -> vector<4x256xf32>
    %cst_36 = arith.constant dense<0.000000e+00> : vector<4xf32>
    %88 = vector.multi_reduction <add>, %81, %cst_36 [1] : vector<4x256xf32> to vector<4xf32>
    %89 = vector.shape_cast %88 : vector<4xf32> to vector<4x1xf32>
    %cst_37 = arith.constant dense<0.000000e+00> : vector<4xf32>
    %90 = vector.multi_reduction <add>, %87, %cst_37 [1] : vector<4x256xf32> to vector<4xf32>
    %91 = vector.shape_cast %90 : vector<4xf32> to vector<4x1xf32>
    %92 = tpu.iota {dimensions = array<i32: 0>} : vector<4x1xi32>
    %c2_i32_38 = arith.constant 2 : i32
    %93 = vector.broadcast %c2_i32_38 : i32 to vector<4x1xi32>
    %94 = arith.cmpi eq, %92, %93 : vector<4x1xi32>
    %cst_39 = arith.constant 1.250000e-01 : f32
    %cst_40 = arith.constant 1.000000e+00 : f32
    %95 = vector.broadcast %cst_39 : f32 to vector<4x1xf32>
    %96 = vector.broadcast %cst_40 : f32 to vector<4x1xf32>
    %97 = arith.select %94, %95, %96 : vector<4x1xi1>, vector<4x1xf32>
    %cst_41 = arith.constant 1.000000e-30 : f32
    %98 = vector.broadcast %cst_41 : f32 to vector<4x1xf32>
    %99 = arith.addf %91, %98 : vector<4x1xf32>
    %100 = arith.divf %89, %99 : vector<4x1xf32>
    %101 = arith.mulf %100, %97 : vector<4x1xf32>
    %c0_i32_42 = arith.constant 0 : i32
    %102 = vector.broadcast %c0_i32_42 : i32 to vector<4x1xi32>
    %103 = arith.cmpi eq, %92, %102 : vector<4x1xi32>
    %c1_i32_43 = arith.constant 1 : i32
    %104 = vector.broadcast %c1_i32_43 : i32 to vector<4x1xi32>
    %105 = arith.cmpi eq, %92, %104 : vector<4x1xi32>
    %c2_i32_44 = arith.constant 2 : i32
    %106 = vector.broadcast %c2_i32_44 : i32 to vector<4x1xi32>
    %107 = arith.cmpi eq, %92, %106 : vector<4x1xi32>
    %cst_45 = arith.constant 1.500000e+00 : f32
    %cst_46 = arith.constant 2.500000e-01 : f32
    %108 = vector.broadcast %cst_45 : f32 to vector<4x1xf32>
    %109 = vector.broadcast %cst_46 : f32 to vector<4x1xf32>
    %110 = arith.select %107, %108, %109 : vector<4x1xi1>, vector<4x1xf32>
    %cst_47 = arith.constant 2.000000e+00 : f32
    %111 = vector.broadcast %cst_47 : f32 to vector<4x1xf32>
    %112 = arith.select %105, %111, %110 : vector<4x1xi1>, vector<4x1xf32>
    %cst_48 = arith.constant 5.000000e-01 : f32
    %113 = vector.broadcast %cst_48 : f32 to vector<4x1xf32>
    %114 = arith.select %103, %113, %112 : vector<4x1xi1>, vector<4x1xf32>
    %115 = arith.mulf %101, %114 : vector<4x1xf32>
    %cst_49 = arith.constant dense<0.000000e+00> : vector<1xf32>
    %116 = vector.multi_reduction <add>, %115, %cst_49 [0] : vector<4x1xf32> to vector<1xf32>
    %117 = vector.shape_cast %116 : vector<1xf32> to vector<1x1xf32>
    %118 = vector.shape_cast %117 : vector<1x1xf32> to vector<1x1xf32>
    %119 = vector.broadcast %118 : vector<1x1xf32> to vector<1x128xf32>
    %120 = vector.shape_cast %101 : vector<4x1xf32> to vector<4x1xf32>
    %121 = vector.broadcast %120 : vector<4x1xf32> to vector<4x128xf32>
    %cst_50 = arith.constant 0.000000e+00 : f32
    %122 = vector.broadcast %cst_50 : f32 to vector<3x128xf32>
    %123 = tpu.concatenate %119, %121, %122 in 0 : vector<1x128xf32>, vector<4x128xf32>, vector<3x128xf32> -> vector<8x128xf32>
    %c0_51 = arith.constant 0 : index
    %c0_52 = arith.constant 0 : index
    %124 = vector.load %arg8[%c0_51, %c0_52] : memref<8x128xf32, #tpu.memory_space<vmem>>, vector<8x128xf32>
    tpu.vector_store %arg8[%c0_51, %c0_52], %123 {strides = array<i32>} : memref<8x128xf32, #tpu.memory_space<vmem>>, vector<8x128xf32>,
    return
  }
}

</mosaic_0001>

<bundles_post_ra>
// kernel: tpu_custom_call.1
= control target key start
LH: loop header
LB: loop body
LE: loop exit
PB: predicated region body
PF: predicated region fallthrough
CT: control target
= control target key end

     0   :  { %13 = vsyncpa [#allocation3], 0  ;;  %s1082_s0 = inlined_call_operand.vmem [shape: f32[2,3,256], index: 0, kind: input, shape index: {}]   ;;  %s1083_s1 = inlined_call_operand.vmem [shape: s32[2,256], index: 1, kind: input, shape index: {}]   ;;  %s1084_s2 = inlined_call_operand.hbm [shape: f32[2,2,256], index: 2, kind: input, shape index: {}]   ;;  %s1085_s3 = inlined_call_operand.hbm [shape: f32[2,2,256], index: 3, kind: input, shape index: {}]   ;;  %s1086_s4 = inlined_call_operand.hbm [shape: f32[2,2,8,256], index: 4, kind: input, shape index: {}]   ;;  %s1087_s5 = inlined_call_operand.vmem [shape: s32[2,8,256], index: 5, kind: input, shape index: {}]   ;;  %s1088_s6 = inlined_call_operand.hbm [shape: f32[2,8,256], index: 6, kind: input, shape index: {}]   ;;  %s1089_s7 = inlined_call_operand.hbm [shape: f32[2,8,256], index: 7, kind: input, shape index: {}]   ;;  %s1090_s8 = inlined_call_operand.hbm [shape: f32[8,128], index: 8, kind: output, shape index: {}]  }
   0x1   :  { %14 = vsyncpa [#allocation6], 0 }
   0x2   :  { %15 = vsyncpa [#allocation9], 0 }
   0x3   :  { %16 = vsyncpa [#allocation4], 0  ;;  %s800_s27 = smov [#allocation5]  }
   0x4   :  { %s38_s28 = sshll.u32 %s800_s27, 4  ;;  %s39_s28 = int_to_ptr.vmem [resolvable:$true] %s38_s28 }
   0x5   :  { %s680_s29 = scalar_lea.vmem %s39_s28, 128  ;;  %p685_p1 = scmp.lt.s32.totalorder %s39_s28, %s39_s28 }
   0x6   :  { %p681_p0 = scmp.ne.s32.totalorder %s39_s28, %s680_s29  ;;  %p686_p2 = scmp.lt.s32.totalorder %s680_s29, %s680_s29 }
   0x8   :  { %p687_p3 = por %p686_p2, %p685_p1 }
   0xa   :  { %p688_p4 = pnand %p687_p3, %p681_p0 }
   0xc   :  { %691 = shalt.err (!%p688_p4)
}
   0xd   :  { %s801_s30 = smov 64   ;;  %s802_s9 = smov 4  }
   0xe   :  { %44 = dma.hbm_to_vmem [thread:$0]  %s1085_s3, 128, %s39_s28, [#allocation6], %s801_s30, %s801_s30, %s802_s9  }
   0xf   :  { %s803_s12 = smov [#allocation8]   ;;  %s804_s14 = smov [#allocation2]  }
  0x10   :  { %s64_s13 = sshll.u32 %s803_s12, 4  ;;  %s26_s15 = sshll.u32 %s804_s14, 4  ;;  %s65_s13 = int_to_ptr.vmem [resolvable:$true] %s64_s13  ;;  %s27_s15 = int_to_ptr.vmem [resolvable:$true] %s26_s15 }
  0x11   :  { %s700_s16 = scalar_lea.vmem %s65_s13, 512  ;;  %p705_p6 = scmp.lt.s32.totalorder %s65_s13, %s65_s13 }
  0x12   :  { %p701_p5 = scmp.ne.s32.totalorder %s65_s13, %s700_s16  ;;  %p706_p7 = scmp.lt.s32.totalorder %s700_s16, %s700_s16 }
  0x14   :  { %p707_p8 = por %p706_p7, %p705_p6 }
  0x16   :  { %p708_p9 = pnand %p707_p8, %p701_p5 }
  0x18   :  { %711 = shalt.err (!%p708_p9)
}
  0x19   :  { %s805_s17 = smov 256   ;;  %s806_s18 = smov 16  }
  0x1a   :  { %70 = dma.hbm_to_vmem [thread:$0]  %s1088_s6, 512, %s65_s13, [#allocation9], %s805_s17, %s805_s17, %s806_s18  }
  0x1b   :  { %s720_s3 = scalar_lea.vmem %s27_s15, 128  ;;  %p725_p11 = scmp.lt.s32.totalorder %s27_s15, %s27_s15 }
  0x1c   :  { %p721_p10 = scmp.ne.s32.totalorder %s27_s15, %s720_s3  ;;  %p726_p12 = scmp.lt.s32.totalorder %s720_s3, %s720_s3 }
  0x1e   :  { %p727_p13 = por %p726_p12, %p725_p11 }
  0x20   :  { %p728_p0 = pnand %p727_p13, %p721_p10 }
  0x22   :  { %731 = shalt.err (!%p728_p0)
}
  0x23   :  { %32 = dma.hbm_to_vmem [thread:$0]  %s1084_s2, 128, %s27_s15, [#allocation3], %s801_s30, %s801_s30, %s802_s9  }
  0x24   :  { %s807_s23 = smov [#allocation7]   ;;  %s808_s25 = smov [#allocation10]  }
  0x25   :  { %s50_s24 = sshll.u32 %s807_s23, 4  ;;  %s76_s26 = sshll.u32 %s808_s25, 4  ;;  %s51_s24 = int_to_ptr.vmem [resolvable:$true] %s50_s24  ;;  %s77_s26 = int_to_ptr.vmem [resolvable:$true] %s76_s26 }
  0x26   :  { %s740_s27 = scalar_lea.vmem %s51_s24, 1024  ;;  %p745_p2 = scmp.lt.s32.totalorder %s51_s24, %s51_s24 }
  0x27   :  { %p741_p1 = scmp.ne.s32.totalorder %s51_s24, %s740_s27  ;;  %p746_p3 = scmp.lt.s32.totalorder %s740_s27, %s740_s27 }
  0x29   :  { %p747_p4 = por %p746_p3, %p745_p2 }
  0x2b   :  { %p748_p5 = pnand %p747_p4, %p741_p1 }
  0x2d   :  { %751 = shalt.err (!%p748_p5)
}
  0x2e   :  { %56 = dma.hbm_to_vmem [thread:$0]  %s1086_s4, 1024, %s51_s24, [#allocation6], %s805_s17, %s805_s17, %s806_s18  }
  0x2f   :  { %s760_s2 = scalar_lea.vmem %s77_s26, 512  ;;  %p765_p7 = scmp.lt.s32.totalorder %s77_s26, %s77_s26 }
  0x30   :  { %p761_p6 = scmp.ne.s32.totalorder %s77_s26, %s760_s2  ;;  %p766_p8 = scmp.lt.s32.totalorder %s760_s2, %s760_s2 }
  0x32   :  { %p767_p9 = por %p766_p8, %p765_p7 }
  0x34   :  { %p768_p10 = pnand %p767_p9, %p761_p6 }
  0x36   :  { %771 = shalt.err (!%p768_p10)
}
  0x37   :  { %82 = dma.hbm_to_vmem [thread:$0]  %s1089_s7, 512, %s77_s26, [#allocation9], %s805_s17, %s805_s17, %s806_s18  }
  0x38   :  { %792 = dma.done.wait [#allocation3], 128  }
  0x39   :  { %793 = vsyncadd [#allocation3], 4294967168 }
  0x3a   :  { %794 = dma.done.wait [#allocation6], 1152  }
  0x3b   :  { %795 = vsyncadd [#allocation6], 4294966144 }
  0x3c   :  { %796 = dma.done.wait [#allocation9], 1024  }
  0x3d   :  { %797 = vsyncadd [#allocation9], 4294966272  ;;  %v809_v0 = vmov 1983009808   ;;  %v183_v2 = vlaneseq  ;;  %v105_v5 = vld [vmem:[%s1082_s0] sm:$0x77] }
  0x3e   :  { %v181_v1 = vunpack.c.l.s4 %v809_v0  ;;  %v106_v6 = vld [vmem:[%s1082_s0 + $0x8] sm:$0x77]  ;;  %v615_v7 = vrot.slane %v105_v5, 9  ;;  %v617_v9 = vrot.slane %v105_v5, 10  ;;  %vm199_vm0 = vcmask 1041409   ;;  %v318_v37 = vld [vmem:[%s1087_s5] sm:$0xff] }
  0x3f   :  { %v884_v4 = vshrl.u32 %v183_v2, 7  ;;  %v616_v8 = vrot.slane %v106_v6, 9  ;;  %v618_v10 = vrot.slane %v106_v6, 10  ;;  %v912_v24 = vld [vmem:[%s1083_s1] sm:$0xf]  ;;  %vm201_vm2 = vcmask 1043459  }
  0x40   :  { %v182_v3 = vunpack.c.0.s8 %v181_v1  ;;  %v115_v12 = vmax.f32 %v105_v5, %v615_v7  ;;  %vm102_vm1 = vcmp.eq.s32.totalorder %v912_v24, 1  ;;  %v319_v38 = vld [vmem:[%s1087_s5 + $0x8] sm:$0xff]  ;;  %v320_v39 = vld [vmem:[%s1087_s5 + $0x10] sm:$0xff]  ;;  %v321_v40 = vld [vmem:[%s1087_s5 + $0x18] sm:$0xff]  ;;  %vm99_vm3 = vcmp.lt.s32.totalorder %v912_v24, 2  ;;  %s814_s5 = smov [#allocation11]  }
  0x41   :  { %v116_v13 = vmax.f32 %v106_v6, %v616_v8  ;;  %v810_v42 = vmov 1966171168   ;;  %v811_v44 = vmov 0.0   ;;  %v941_v47 = vcvt.s32.f32 %v318_v37  ;;  %v346_v48 = vld [vmem:[#allocation7] sm:$0xff]  ;;  %v347_v52 = vld [vmem:[#allocation7 + $0x8] sm:$0xff]  ;;  %v348_v53 = vld [vmem:[#allocation7 + $0x10] sm:$0xff] }
  0x42   :  { %v893_v11 = vsub.s32 %v182_v3, %v884_v4  ;;  %v895_v14 = vmax.f32 %v115_v12, %v617_v9  ;;  %v933_v43 = vunpack.c.l.s4 %v810_v42  ;;  %v937_v45 = vsel %vm102_vm1, 1.0, %v811_v44  ;;  %v349_v54 = vld [vmem:[#allocation7 + $0x18] sm:$0xff]  ;;  %v350_v58 = vld [vmem:[#allocation7 + $0x20] sm:$0xff]  ;;  %v352_v59 = vld [vmem:[#allocation7 + $0x30] sm:$0xff]  ;;  %s602_s19 = sshll.u32 %s814_s5, 4  ;;  %s603_s19 = int_to_ptr.vmem [resolvable:$true] %s602_s19 }
  0x43   :  { %v897_v15 = vmax.f32 %v116_v13, %v618_v10  ;;  %v943_v49 = vcvt.s32.f32 %v319_v38  ;;  %v945_v50 = vcvt.s32.f32 %v320_v39  ;;  %v947_v51 = vcvt.s32.f32 %v321_v40  ;;  %v351_v1 = vld [vmem:[#allocation7 + $0x28] sm:$0xff]  ;;  %v353_v2 = vld [vmem:[#allocation7 + $0x38] sm:$0xff]  ;;  %s772_s20 = scalar_lea.vmem %s603_s19, 128  ;;  %p777_p12 = scmp.lt.s32.totalorder %s603_s19, %s603_s19 }
  0x44   :  { %v186_v16 = vrot.slane %v105_v5, %v893_v11  ;;  %v901_v17 = vrot.slane %v106_v6, %v893_v11  ;;  %v125_v18 = vsub.f32 %v105_v5, %v895_v14  ;;  %v133_v20 = vrot.slane %v895_v14, 7  ;;  %p773_p11 = scmp.ne.s32.totalorder %s603_s19, %s772_s20  ;;  %p778_p13 = scmp.lt.s32.totalorder %s772_s20, %s772_s20 }
  0x45   :  { %v126_v19 = vsub.f32 %v106_v6, %v897_v15  ;;  %v134_v21 = vrot.slane %v897_v15, 7  ;;  %v153_v22 = vrot.slane %v895_v14, 6  ;;  %v154_v23 = vrot.slane %v897_v15, 6 }
  0x46   :  { %v127_v25 = vmul.f32 1.442695, %v125_v18  ;;  %v137_v27 = vsub.f32 %v105_v5, %v133_v20  ;;  %v915_v31 = vrot.slane %v901_v17, 7  ;;  %v208_v34 = vrot.slane %v186_v16, 1  ;;  %p779_p0 = por %p778_p13, %p777_p12 }
  0x47   :  { %v129_v26 = vmul.f32 1.442695, %v126_v19  ;;  %v138_v28 = vsub.f32 %v106_v6, %v134_v21  ;;  %v157_v29 = vsub.f32 %v105_v5, %v153_v22  ;;  %v158_v30 = vsub.f32 %v106_v6, %v154_v23 }
  0x48   :  { %638 = vpow2.f32 %v127_v25  ;;  %v139_v32 = vmul.f32 1.442695, %v137_v27  ;;  %v200_v41 = vsel %vm199_vm0, %v915_v31, %v186_v16  ;;  %v211_v46 = vsel %vm199_vm0, %v901_v17, %v208_v34  ;;  %p780_p1 = pnand %p779_p0, %p773_p11 }
  0x49   :  { %v141_v33 = vmul.f32 1.442695, %v138_v28  ;;  %640 = vpow2.f32 %v129_v26  ;;  %v159_v35 = vmul.f32 1.442695, %v157_v29  ;;  %v161_v36 = vmul.f32 1.442695, %v158_v30 }
  0x4a   :  { %642 = vpow2.f32 %v139_v32  ;;  %v951_v55 = vsel %vm99_vm3, 1.0, %v811_v44  ;;  %v202_v56 = vsel %vm201_vm2, %v915_v31, %v200_v41  ;;  %vm203_vm4 = vcmask 1045509  }
  0x4b   :  { %644 = vpow2.f32 %v141_v33  ;;  %v212_v57 = vsel %vm201_vm2, %v901_v17, %v211_v46  ;;  %vm416_vm5 = vcmask 1041408   ;;  %v264_v60 = vunpack.c.0.s8 %v933_v43 }
  0x4c   :  { %646 = vpow2.f32 %v159_v35  ;;  %v958_v61 = vsub.f32 %v348_v53, %v346_v48  ;;  %v960_v62 = vsub.f32 %v349_v54, %v347_v52  ;;  %v412_v63 = vrot.slane %v937_v45, %v893_v11 }
  0x4d   :  { %648 = vpow2.f32 %v161_v36  ;;  %v966_v0 = vsel %vm203_vm4, %v915_v31, %v202_v56  ;;  %v519_v3 = vrot.slane %v951_v55, %v893_v11  ;;  %v537_v5 = vadd.f32 %v945_v50, %v941_v47 }
  0x4e   :  { %v538_v6 = vadd.f32 %v947_v51, %v943_v49  ;;  %v976_v7 = vsel %vm203_vm4, %v901_v17, %v212_v57  ;;  %v978_v8 = vsub.f32 %v352_v59, %v350_v58  ;;  %v413_v9 = vcombine.high %v412_v63, %v412_v63 }
  0x4f   :  { %v417_v10 = vsel %vm416_vm5, %v412_v63, 0.0  ;;  %v520_v13 = vcombine.high %v519_v3, %v519_v3  ;;  %v523_v16 = vsel %vm416_vm5, %v519_v3, 0.0  ;;  %v539_v18 = vrot.slane %v537_v5, 4 }
  0x50   :  { %v418_v12 = vrot.slane %v417_v10, 4  ;;  %v982_v19 = vsub.f32 %v353_v2, %v351_v1  ;;  %v424_v20 = vsel %vm416_vm5, %v413_v9, 0.0  ;;  %v524_v21 = vrot.slane %v523_v16, 4 }
  0x51   :  { %v545_v22 = vrot.slane %v538_v6, 4  ;;  %v425_v26 = vrot.slane %v424_v20, 4  ;;  %vm504_vm6 = vcmask 1040384   ;;  %v530_v27 = vsel %vm416_vm5, %v520_v13, 0.0 }
  0x52   :  { %v419_v25 = vadd.f32 %v418_v12, %v417_v10  ;;  %v540_v28 = vadd.f32 %v539_v18, %v537_v5  ;;  %vm205_vm7 = vcmask 1047559   ;;  %v362_v30 = vand.u32 2147483647, %v958_v61 }
  0x53   :  { %v525_v32 = vadd.f32 %v524_v21, %v523_v16  ;;  %v531_v33 = vrot.slane %v530_v27, 4  ;;  %v546_v34 = vadd.f32 %v545_v22, %v538_v6  ;;  %v363_v36 = vand.u32 2147483647, %v960_v62 }
  0x54   :  { %v420_v37 = vrot.slane %v419_v25, 2  ;;  %v426_v38 = vadd.f32 %v425_v26, %v424_v20  ;;  %vm509_vm8 = vcmask 1042432   ;;  %v541_v39 = vrot.slane %v540_v28, 2 }
  0x55   :  { %v639_v23 = vpop.eup %638  ;;  %v526_v42 = vrot.slane %v525_v32, 2  ;;  %v532_v44 = vadd.f32 %v531_v33, %v530_v27  ;;  %v547_v46 = vrot.slane %v546_v34, 2  ;;  %vm557_vm9 = vcmask 1043456  }
  0x56   :  { %v641_v29 = vpop.eup %640  ;;  %v421_v53 = vadd.f32 %v420_v37, %v419_v25  ;;  %v427_v54 = vrot.slane %v426_v38, 2  ;;  %v542_v56 = vadd.f32 %v541_v39, %v540_v28  ;;  %vm179_vm10 = vcmp.eq.s32.totalorder %v912_v24, 0 }
  0x57   :  { %v643_v35 = vpop.eup %642  ;;  %v527_v63 = vadd.f32 %v526_v42, %v525_v32  ;;  %v533_v1 = vrot.slane %v532_v44, 2  ;;  %v548_v21 = vadd.f32 %v547_v46, %v546_v34  ;;  %v206_v34 = vsel %vm205_vm7, %v915_v31, %v966_v0  ;;  %v256_v46 = vld [vmem:[#allocation2 + $0x4] sm:$0xf]  ;;  %v257_v0 = vld [vmem:[#allocation5] sm:$0xf] }
  0x58   :  { %v645_v40 = vpop.eup %644  ;;  %v619_v41 = vrot.slane %v643_v35, 9  ;;  %v422_v5 = vrot.slane %v421_v53, 1  ;;  %v428_v6 = vadd.f32 %v427_v54, %v426_v38  ;;  %v543_v13 = vrot.slane %v542_v56, 1 }
  0x59   :  { %v647_v48 = vpop.eup %646  ;;  %v620_v52 = vrot.slane %v645_v40, 9  ;;  %v528_v10 = vrot.slane %v527_v63, 1  ;;  %v534_v12 = vadd.f32 %v533_v1, %v532_v44  ;;  %v549_v28 = vrot.slane %v548_v21, 1  ;;  %v255_v44 = vld [vmem:[#allocation2] sm:$0xf] }
  0x5a   :  { %v649_v57 = vpop.eup %648  ;;  %v151_v58 = vadd.f32 %v639_v23, %v619_v41  ;;  %v621_v59 = vrot.slane %v647_v48, 10  ;;  %v423_v18 = vadd.f32 %v422_v5, %v421_v53  ;;  %v429_v20 = vrot.slane %v428_v6, 1 }
  0x5b   :  { %v152_v2 = vadd.f32 %v641_v29, %v620_v52  ;;  %v622_v3 = vrot.slane %v649_v57, 10  ;;  %v529_v22 = vadd.f32 %v528_v10, %v527_v63  ;;  %v535_v25 = vrot.slane %v534_v12, 1 }
  0x5c   :  { %v171_v9 = vadd.f32 %v621_v59, %v151_v58  ;;  %v544_v26 = vadd.f32 %v543_v13, %v542_v56  ;;  %v364_v23 = vand.u32 2147483647, %v978_v8  ;;  %v430_v27 = vadd.f32 %v429_v20, %v428_v6 }
  0x5d   :  { %v172_v16 = vadd.f32 %v622_v3, %v152_v2  ;;  %v365_v29 = vand.u32 2147483647, %v982_v19  ;;  %v536_v32 = vadd.f32 %v535_v25, %v534_v12  ;;  %v551_v33 = vsel %vm504_vm6, %v529_v22, %v423_v18  ;;  %v326_v25 = vld [vmem:[#allocation8] sm:$0xff] }
  0x5e   :  { %650 = vlog2.f32 %v171_v9  ;;  %v366_v35 = vsub.f32 0.0, %v362_v30  ;;  %v550_v37 = vadd.f32 %v549_v28, %v548_v21  ;;  %v553_v38 = vsel %vm416_vm5, %v551_v33, %v423_v18  ;;  %v258_v30 = vld [vmem:[#allocation5 + $0x4] sm:$0xf]  ;;  %v330_v28 = vld [vmem:[#allocation10] sm:$0xff] }
  0x5f   :  { %652 = vlog2.f32 %v172_v16  ;;  %v214_v39 = vsel %vm205_vm7, %v901_v17, %v976_v7  ;;  %v367_v40 = vsub.f32 0.0, %v363_v36  ;;  %v552_v41 = vsel %vm504_vm6, %v536_v32, %v430_v27 }
  0x60   :  { %v555_v42 = vsel %vm509_vm8, %v553_v38, %v544_v26  ;;  %v368_v48 = vsub.f32 0.0, %v364_v23  ;;  %v554_v52 = vsel %vm416_vm5, %v552_v41, %v430_v27  ;;  %v369_v53 = vsub.f32 0.0, %v365_v29  ;;  %v327_v26 = vld [vmem:[#allocation8 + $0x8] sm:$0xff]  ;;  %v328_v27 = vld [vmem:[#allocation8 + $0x10] sm:$0xff] }
  0x61   :  { %v563_v31 = vsel %vm557_vm9, %v555_v42, 0.0  ;;  %v556_v54 = vsel %vm509_vm8, %v554_v52, %v550_v37  ;;  %v216_v17 = vsel %vm179_vm10, %v206_v34, %v214_v39  ;;  %v267_v7 = vsub.s32 %v264_v60, %v884_v4  ;;  %v331_v29 = vld [vmem:[#allocation10 + $0x8] sm:$0xff]  ;;  %v333_v37 = vld [vmem:[#allocation10 + $0x18] sm:$0xff] }
  0x62   :  { %v370_v36 = vmul.f32 1.442695, %v366_v35  ;;  %v564_v56 = vsel %vm557_vm9, %v556_v54, 0.0  ;;  %v372_v57 = vmul.f32 1.442695, %v367_v40  ;;  %v259_v59 = vsub.f32 %v255_v44, %v257_v0  ;;  %v329_v35 = vld [vmem:[#allocation8 + $0x18] sm:$0xff] }
  0x63   :  { %v565_v58 = vadd.f32 %v564_v56, %v563_v31  ;;  %v260_v63 = vsub.f32 %v256_v46, %v258_v30  ;;  %v374_v1 = vmul.f32 1.442695, %v368_v48  ;;  %v376_v2 = vmul.f32 1.442695, %v369_v53 }
  0x64   :  { %v224_v3 = vrot.slane %v216_v17, %v893_v11  ;;  %654 = vpow2.f32 %v370_v36  ;;  %v268_v24 = vrot.slane %v937_v45, %v267_v7  ;;  %v270_v5 = vmul.f32 %v259_v59, %v259_v59 }
  0x65   :  { %566 = vadd.xlane.f32.xlu0 %v565_v58  ;;  %v271_v6 = vmul.f32 %v260_v63, %v260_v63  ;;  %656 = vpow2.f32 %v372_v57  ;;  %v274_v13 = vsub.s32 0, %v884_v4  ;;  %v278_v16 = vsub.s32 1, %v884_v4 }
  0x66   :  { %658 = vpow2.f32 %v374_v1  ;;  %v225_v12 = vrot.slane %v224_v3, 1  ;;  %v269_v20 = vcombine.high %v268_v24, %v268_v24  ;;  %v300_v21 = vrot.slane %v270_v5, %v893_v11 }
  0x67   :  { %660 = vpow2.f32 %v376_v2  ;;  %v308_v45 = vrot.slane %v271_v6, %v893_v11  ;;  %v1018_v33 = vrot.slane %v268_v24, %v274_v13  ;;  %v1020_v34 = vrot.slane %v268_v24, %v278_v16 }
  0x68   :  { %v1022_v38 = vrot.slane %v269_v20, %v274_v13  ;;  %v1024_v39 = vrot.slane %v269_v20, %v278_v16  ;;  %v301_v40 = vcombine.high %v300_v21, %v300_v21  ;;  %v334_v44 = vsub.f32 %v326_v25, %v330_v28 }
  0x69   :  { %v335_v46 = vsub.f32 %v327_v26, %v331_v29  ;;  %v337_v52 = vsub.f32 %v329_v35, %v333_v37  ;;  %v314_v0 = vmul.f32 %v300_v21, %v1018_v33  ;;  %v358_v37 = vmax.f32 %v958_v61, 0.0 }
  0x6a   :  { %v315_v53 = vmul.f32 %v301_v40, %v1020_v34  ;;  %v316_v54 = vmul.f32 %v308_v45, %v1022_v38  ;;  %v338_v56 = vmul.f32 %v334_v44, %v334_v44  ;;  %v395_v44 = vmul.f32 %v960_v62, %v943_v49 }
  0x6b   :  { %v651_v43 = vpop.eup %650  ;;  %v339_v57 = vmul.f32 %v335_v46, %v335_v46  ;;  %v341_v2 = vmul.f32 %v337_v52, %v337_v52  ;;  %v396_v46 = vmul.f32 %v978_v8, %v945_v50  ;;  %vm570_vm11 = vcmp.eq.s32.totalorder %v884_v4, 2 }
  0x6c   :  { %v653_v60 = vpop.eup %652  ;;  %v174_v9 = vmul.f32 0.6931472, %v651_v43  ;;  %v456_v43 = vsel %vm416_vm5, %v314_v0, 0.0  ;;  %v459_v13 = vsel %vm416_vm5, %v315_v53, 0.0  ;;  %v342_v21 = vmul.f32 %v338_v56, %v941_v47 }
  0x6d   :  { %v176_v10 = vmul.f32 0.6931472, %v653_v60  ;;  %v345_v26 = vmul.f32 %v341_v2, %v947_v51  ;;  %vm577_vm12 = vcmp.eq.s32.totalorder %v884_v4, 1  ;;  %vm576_vm13 = vcmp.eq.s32.totalorder %v884_v4, 0 }
  0x6e   :  { %v177_v18 = vadd.f32 %v174_v9, %v895_v14  ;;  %v332_v14 = vld [vmem:[#allocation10 + $0x10] sm:$0xff]  ;;  %vm593_vm14 = vcmask 1044480  }
  0x6f   :  { %v178_v22 = vadd.f32 %v176_v10, %v897_v15  ;;  %v309_v15 = vcombine.high %v308_v45, %v308_v45  ;;  %v336_v48 = vsub.f32 %v328_v27, %v332_v14  ;;  %v457_v10 = vsel %vm416_vm5, %v316_v54, 0.0 }
  0x70   :  { %v228_v23 = vsub.f32 %v177_v18, %v224_v3  ;;  %v458_v20 = vadd.f32 %v457_v10, %v456_v43 }
  0x71   :  { %v229_v32 = vsub.f32 %v178_v22, %v225_v12  ;;  %v655_v30 = vpop.eup %654  ;;  %v317_v17 = vmul.f32 %v309_v15, %v1024_v39  ;;  %v340_v1 = vmul.f32 %v336_v48, %v336_v48  ;;  %v343_v22 = vmul.f32 %v339_v57, %v943_v49 }
  0x72   :  { %v238_v41 = vrot.slane %v228_v23, %v893_v11  ;;  %v657_v7 = vpop.eup %656  ;;  %v378_v58 = vadd.f32 1.0, %v655_v30  ;;  %v462_v27 = vsel %vm416_vm5, %v458_v20, 0.0  ;;  %v359_v48 = vmax.f32 %v960_v62, 0.0 }
  0x73   :  { %v245_v42 = vrot.slane %v229_v32, %v893_v11  ;;  %v659_v59 = vpop.eup %658  ;;  %v379_v3 = vadd.f32 1.0, %v657_v7  ;;  %v460_v16 = vsel %vm416_vm5, %v317_v17, 0.0  ;;  %v344_v25 = vmul.f32 %v340_v1, %v945_v50 }
  0x74   :  { %v661_v24 = vpop.eup %660  ;;  %v380_v6 = vadd.f32 1.0, %v659_v59  ;;  %662 = vlog2.f32 %v378_v58  ;;  %v461_v45 = vadd.f32 %v460_v16, %v459_v13  ;;  %v491_v32 = vadd.f32 %v345_v26, %v343_v22 }
  0x75   :  { %v248_v31 = vrot.slane %v245_v42, 7  ;;  %v381_v9 = vadd.f32 1.0, %v661_v24  ;;  %664 = vlog2.f32 %v379_v3  ;;  %v463_v14 = vrot.slane %v462_v27, 4 }
  0x76   :  { %666 = vlog2.f32 %v380_v6  ;;  %v469_v29 = vsel %vm416_vm5, %v461_v45, 0.0  ;;  %v394_v42 = vmul.f32 %v958_v61, %v941_v47  ;;  %v498_v53 = vrot.slane %v491_v32, 4 }
  0x77   :  { %v249_v36 = vsel %vm199_vm0, %v248_v31, %v238_v41  ;;  %668 = vlog2.f32 %v381_v9  ;;  %v470_v15 = vrot.slane %v469_v29, 4  ;;  %v361_v17 = vmax.f32 %v982_v19, 0.0 }
  0x78   :  { %v250_v63 = vsel %vm201_vm2, %v248_v31, %v249_v36  ;;  %v464_v47 = vadd.f32 %v463_v14, %v462_v27  ;;  %v397_v50 = vmul.f32 %v982_v19, %v947_v51  ;;  %v499_v2 = vadd.f32 %v498_v53, %v491_v32 }
  0x79   :  { %v251_v5 = vsel %vm203_vm4, %v248_v31, %v250_v63  ;;  %v471_v58 = vadd.f32 %v470_v15, %v469_v29 }
  0x7a   :  { %v252_v60 = vsel %vm205_vm7, %v248_v31, %v251_v5  ;;  %v360_v31 = vmax.f32 %v978_v8, 0.0  ;;  %v465_v6 = vrot.slane %v464_v47, 2 }
  0x7b   :  { %v254_v12 = vmul.f32 %v951_v55, %v252_v60  ;;  %v472_v10 = vrot.slane %v471_v58, 2 }
  0x7d   :  { %v438_v18 = vrot.slane %v254_v12, %v893_v11  ;;  %v490_v11 = vadd.f32 %v344_v25, %v342_v21  ;;  %v473_v45 = vadd.f32 %v472_v10, %v471_v58  ;;  %v500_v25 = vrot.slane %v499_v2, 2 }
  0x7f   :  { %v439_v23 = vcombine.high %v438_v18, %v438_v18  ;;  %v442_v55 = vsel %vm416_vm5, %v438_v18, 0.0  ;;  %v492_v30 = vrot.slane %v490_v11, 4  ;;  %v466_v18 = vadd.f32 %v465_v6, %v464_v47 }
  0x80   :  { %v443_v35 = vrot.slane %v442_v55, 4  ;;  %v501_v32 = vadd.f32 %v500_v25, %v499_v2 }
  0x81   :  { %v449_v28 = vsel %vm416_vm5, %v439_v23, 0.0  ;;  %v663_v41 = vpop.eup %662  ;;  %v493_v1 = vadd.f32 %v492_v30, %v490_v11  ;;  %v474_v11 = vrot.slane %v473_v45, 1 }
  0x82   :  { %v450_v40 = vrot.slane %v449_v28, 4  ;;  %v665_v52 = vpop.eup %664  ;;  %v383_v0 = vmul.f32 0.6931472, %v663_v41  ;;  %v444_v36 = vadd.f32 %v443_v35, %v442_v55 }
  0x83   :  { %v667_v54 = vpop.eup %666  ;;  %v385_v7 = vmul.f32 0.6931472, %v665_v52  ;;  %v494_v20 = vrot.slane %v493_v1, 2  ;;  %v475_v41 = vadd.f32 %v474_v11, %v473_v45 }
  0x84   :  { %v669_v61 = vpop.eup %668  ;;  %v387_v56 = vmul.f32 0.6931472, %v667_v54  ;;  %v390_v49 = vadd.f32 %v383_v0, %v358_v37  ;;  %v451_v57 = vadd.f32 %v450_v40, %v449_v28  ;;  %v445_v5 = vrot.slane %v444_v36, 2 }
  0x85   :  { %v389_v62 = vmul.f32 0.6931472, %v669_v61  ;;  %v391_v59 = vadd.f32 %v385_v7, %v359_v48  ;;  %v495_v28 = vadd.f32 %v494_v20, %v493_v1  ;;  %v813_v1 = vmov 1.0  }
  0x86   :  { %v392_v8 = vadd.f32 %v387_v56, %v360_v31  ;;  %v398_v63 = vsub.f32 %v390_v49, %v394_v42  ;;  %v452_v9 = vrot.slane %v451_v57, 2  ;;  %v446_v16 = vadd.f32 %v445_v5, %v444_v36 }
  0x87   :  { %v393_v3 = vadd.f32 %v389_v62, %v361_v17  ;;  %v399_v24 = vsub.f32 %v391_v59, %v395_v44  ;;  %v496_v40 = vrot.slane %v495_v28, 1  ;;  %v502_v44 = vrot.slane %v501_v32, 1 }
  0x88   :  { %v400_v43 = vsub.f32 %v392_v8, %v396_v46  ;;  %v402_v60 = vmul.f32 %v398_v63, %v1018_v33  ;;  %v453_v21 = vadd.f32 %v452_v9, %v451_v57  ;;  %v447_v55 = vrot.slane %v446_v16, 1 }
  0x89   :  { %v401_v12 = vsub.f32 %v393_v3, %v397_v50  ;;  %v403_v13 = vmul.f32 %v399_v24, %v1020_v34  ;;  %v467_v33 = vrot.slane %v466_v18, 1  ;;  %v497_v31 = vadd.f32 %v496_v40, %v495_v28 }
  0x8a   :  { %v404_v51 = vmul.f32 %v400_v43, %v1022_v38  ;;  %v454_v29 = vrot.slane %v453_v21, 1  ;;  %v503_v53 = vadd.f32 %v502_v44, %v501_v32  ;;  %v812_v62 = vmov 0.25  }
  0x8b   :  { %v405_v19 = vmul.f32 %v401_v12, %v1024_v39  ;;  %v448_v39 = vadd.f32 %v447_v55, %v446_v16  ;;  %v468_v14 = vadd.f32 %v467_v33, %v466_v18  ;;  %v578_v59 = vsel %vm570_vm11, 1.5, %v812_v62 }
  0x8c   :  { %v476_v22 = vadd.f32 %v404_v51, %v402_v60  ;;  %v455_v15 = vadd.f32 %v454_v29, %v453_v21  ;;  %v579_v63 = vsel %vm577_vm12, 2.0, %v578_v59  ;;  %v571_v2 = vsel %vm570_vm11, 0.125, %v813_v1 }
  0x8d   :  { %v477_v26 = vadd.f32 %v405_v19, %v403_v13  ;;  %v505_v0 = vsel %vm504_vm6, %v448_v39, %v468_v14  ;;  %v580_v5 = vsel %vm576_vm13, 0.5, %v579_v63 }
  0x8e   :  { %v478_v23 = vrot.slane %v476_v22, 4  ;;  %v506_v54 = vsel %vm504_vm6, %v455_v15, %v475_v41 }
  0x8f   :  { %v484_v27 = vrot.slane %v477_v26, 4 }
  0x90   :  { %v479_v34 = vadd.f32 %v478_v23, %v476_v22 }
  0x91   :  { %v485_v38 = vadd.f32 %v484_v27, %v477_v26 }
  0x92   :  { %v480_v35 = vrot.slane %v479_v34, 2 }
  0x93   :  { %v486_v37 = vrot.slane %v485_v38, 2 }
  0x94   :  { %v481_v42 = vadd.f32 %v480_v35, %v479_v34 }
  0x95   :  { %v487_v46 = vadd.f32 %v486_v37, %v485_v38 }
  0x96   :  { %v482_v48 = vrot.slane %v481_v42, 1 }
  0x97   :  { %v488_v52 = vrot.slane %v487_v46, 1 }
  0x98   :  { %v483_v30 = vadd.f32 %v482_v48, %v481_v42 }
  0x99   :  { %v489_v17 = vadd.f32 %v488_v52, %v487_v46 }
  0x9a   :  { %v507_v7 = vsel %vm416_vm5, %v505_v0, %v483_v30 }
  0x9b   :  { %v508_v36 = vsel %vm416_vm5, %v506_v54, %v489_v17  ;;  %v510_v47 = vsel %vm509_vm8, %v507_v7, %v497_v31 }
  0x9c   :  { %v511_v61 = vsel %vm509_vm8, %v508_v36, %v503_v53  ;;  %v558_v56 = vsel %vm557_vm9, %v510_v47, 0.0 }
  0x9d   :  { %v559_v49 = vsel %vm557_vm9, %v511_v61, 0.0 }
  0x9e   :  { %v560_v57 = vadd.f32 %v559_v49, %v558_v56 }
  0xa0   :  { %561 = vadd.xlane.f32.xlu0 %v560_v57 }
  0xee   :  { %v567_v58 = vpop.xlane.xlu0 %566 }
  0xef   :  { %v572_v50 = vadd.f32 1e-30, %v567_v58 }
  0xf1   :  { %670 = vrcp.f32 %v572_v50 }
  0xfe   :  { %v671_v8 = vpop.eup %670 }
 0x129   :  { %v562_v3 = vpop.xlane.xlu0 %561 }
 0x12a   :  { %v574_v24 = vmul.f32 %v671_v8, %v562_v3 }
 0x12c   :  { %v575_v6 = vmul.f32 %v574_v24, %v571_v2 }
 0x12e   :  { %v581_v43 = vmul.f32 %v580_v5, %v575_v6  ;;  %v590_v19 = vrot.slane %v575_v6, 7 }
 0x130   :  { %v582_v60 = vsel %vm557_vm9, %v581_v43, 0.0 }
 0x131   :  { %v583_v9 = vrot.slane %v582_v60, 4 }
 0x133   :  { %v584_v10 = vadd.f32 %v583_v9, %v582_v60 }
 0x135   :  { %v585_v12 = vrot.slane %v584_v10, 2 }
 0x137   :  { %v586_v13 = vadd.f32 %v585_v12, %v584_v10 }
 0x139   :  { %v587_v51 = vrot.slane %v586_v13, 1 }
 0x13b   :  { %v588_v16 = vadd.f32 %v587_v51, %v586_v13 }
 0x13d   :  { %v592_v4 = vsel %vm504_vm6, %v588_v16, %v590_v19 }
 0x13e   :  { %v594_v18 = vsel %vm593_vm14, %v592_v4, 0.0 }
 0x13f   :  { %595 = vst [vmem:[#allocation11] sm:$0xff] %v594_v18 }
 0x140   :  { %783 = shalt.err (!%p780_p1)
}
 0x141   :  { %605 = dma.vmem_to_hbm [thread:$0]  %s603_s19, 128, %s1090_s8, [#allocation4]  }
 0x142   :  { %798 = dma.done.wait [#allocation4], 128  }
 0x143   :  { %799 = vsyncadd [#allocation4], 4294967168 }
 0x144   :  { %609 = vsyncpa [#allocation3], 1 }
 0x145   :  { %610 = vsyncpa [#allocation6], 1 }
 0x146   :  { %611 = vsyncpa [#allocation9], 1 }
 0x147   :  { %612 = vsyncpa [#allocation4], 1 }

</bundles_post_ra>
